<compile_context>
chip_gen: v5e
topology: v5e:2x2
jax: 0.10.0
libtpu: 0.0.40
codegen_flags: <defaults>
</compile_context>

<pallas_src>
import functools

import jax
import jax.numpy as jnp
from jax.experimental import pallas as pl
from jax.experimental.pallas import tpu as pltpu


def _round_up(x, m):
    return (x + m - 1) // m * m


def _vmem_limit_bytes():
    """~70% of per-core VMEM (v7x: 64 MiB, v5e/v6e: 128 MiB), capped at 96 MiB."""
    cap = 64 * 1024 * 1024  # conservative fallback: v7x per-TensorCore VMEM
    try:
        cap = int(pltpu.get_tpu_info().vmem_capacity_bytes)
    except Exception:  # no TPU visible / interpret mode / API drift
        pass
    return min(int(cap * 0.7), 96 * 1024 * 1024)


def _choose_k(rows, hw, max_k=16):
    """How many spatial rows to pack per 128-lane row (lane-density for the EUP work)."""
    if hw % 128 == 0:
        return 1
    best_k = 1
    best_util = hw / _round_up(hw, 128)
    for k in range(2, max_k + 1):
        if rows % k or rows // k < 8:      # must divide rows; keep >= one sublane group
            continue
        width = k * hw
        util = width / _round_up(width, 128)
        if util > best_util + 1e-9:        # strict improvement -> smallest good k
            best_k, best_util = k, util
    return best_k


def _choose_rows_tile(packed_rows, lanes, in_itemsize, out_itemsize, vmem_limit):
    """Pick rows per block: byte-capped blocks, budgeted against double-buffered VMEM."""
    sub = max(8, 32 // in_itemsize)            # sublane packing: 8 f32 / 16 bf16 / 32 int8
    lane_pad = _round_up(lanes, 128)
    in_row = lane_pad * in_itemsize            # one row of the (double-buffered) input block
    out_row = 128 * out_itemsize               # output block pads k -> 128 lanes
    scratch_row = lane_pad * 4                 # allowance for f32 elementwise temporaries
    per_row = 2 * in_row + 2 * out_row + scratch_row

    budget = int(vmem_limit * 0.85)
    max_rows = max(sub, (budget // per_row) // sub * sub)

    # Per-generation block target: v7x (~3.2 TB/s HBM, 64 MiB VMEM) wants bigger blocks.
    is_small_vmem = vmem_limit <= 48 * 1024 * 1024
    target_bytes = (16 if is_small_vmem else 8) * 1024 * 1024
    target_rows = max(sub, (target_bytes // in_row) // sub * sub)

    tile = min(max_rows, target_rows)
    if tile >= packed_rows:
        return packed_rows                     # single full-extent block

    # Balance across the two v7x TensorCores: even number of near-equal grid steps.
    steps = pl.cdiv(packed_rows, tile)
    if steps % 2:
        steps += 1
    tile = min(tile, _round_up(pl.cdiv(packed_rows, steps), sub))
    return max(sub, tile)


def _gem_kernel(p_ref, x_ref, o_ref, *, eps, inv_hw, k, hw):
    # p_ref: SMEM (1,) f32 exponent
    # x_ref: VMEM (rows_tile, k*hw) in the storage dtype
    # o_ref: VMEM (rows_tile, k)
    p = p_ref[0]
    # Compute log/exp in f32: v5e has no bf16 EUP, and f32 keeps exp(p*log(x)) accurate.
    x = x_ref[...].astype(jnp.float32)
    xc = jnp.maximum(x, eps)                   # clamp(min=eps); keeps log finite (also for
                                               # garbage rows of a ragged last block).
    xp = jnp.exp(p * jnp.log(xc))              # x ** p (EUP)
    if k == 1:
        s = jnp.sum(xp, axis=-1, keepdims=True, dtype=jnp.float32)          # (rows_tile, 1)
    else:
        # Segment-sum the k packed spatial rows with a tiny one-hot matmul (MXU is idle;
        # avoids lane-splitting reshapes). onehot[c, j] = 1 iff column c belongs to row j.
        col_seg = jax.lax.broadcasted_iota(jnp.int32, (k * hw, k), 0) // hw
        out_seg = jax.lax.broadcasted_iota(jnp.int32, (k * hw, k), 1)
        onehot = (col_seg == out_seg).astype(jnp.float32)
        s = jnp.dot(xp, onehot, preferred_element_type=jnp.float32)         # (rows_tile, k)
    m = s * inv_hw                             # mean over (H, W); 1/hw is a trace-time const
    inv_p = 1.0 / p
    o_ref[...] = jnp.exp(jnp.log(m) * inv_p).astype(o_ref.dtype)            # m ** (1/p)


def gem_pool(x, p, eps=1e-6, rows_tile=None):
    """GeM pooling. x: (N, C, H, W), p: (1,) float. Returns (N, C, 1, 1)."""
    N, C, H, W = x.shape
    rows, hw = N * C, H * W

    k = _choose_k(rows, hw)                    # spatial rows packed per lane-row
    packed_rows = rows // k
    lanes = k * hw
    x2 = x.reshape(packed_rows, lanes)         # free view of contiguous NCHW

    itemsize = jnp.dtype(x.dtype).itemsize
    vmem_limit = _vmem_limit_bytes()
    if rows_tile is None:
        rows_tile = _choose_rows_tile(packed_rows, lanes, itemsize, itemsize, vmem_limit)

    grid = (pl.cdiv(packed_rows, rows_tile),)  # ragged last block handled by Pallas
    kernel = functools.partial(_gem_kernel, eps=float(eps), inv_hw=1.0 / hw, k=k, hw=hw)

    cost = pl.CostEstimate(
        flops=3 * rows * hw,                   # clamp + p*log + mean (matmul reduce is tiny)
        transcendentals=2 * rows * hw,         # log + exp per element
        bytes_accessed=rows * hw * itemsize + rows * itemsize,
    )

    out = pl.pallas_call(
        kernel,
        out_shape=jax.ShapeDtypeStruct((packed_rows, k), x.dtype),
        grid=grid,
        in_specs=[
            pl.BlockSpec(memory_space=pltpu.SMEM),               # p (scalar exponent)
            pl.BlockSpec((rows_tile, lanes), lambda i: (i, 0)),  # x row-block
        ],
        out_specs=pl.BlockSpec((rows_tile, k), lambda i: (i, 0)),
        compiler_params=pltpu.CompilerParams(
            dimension_semantics=("parallel",),
            vmem_limit_bytes=vmem_limit),
        cost_estimate=cost,
    )(p.astype(jnp.float32), x2)

    return out.reshape(N, C, 1, 1)


def gem_ref(x, p, eps=1e-6):
    """Pure-JAX reference matching the PyTorch module."""
    xf = x.astype(jnp.float32)
    m = jnp.mean(jnp.maximum(xf, eps) ** p[0], axis=(-2, -1), keepdims=True)
    return (m ** (1.0 / p[0])).astype(x.dtype)


if __name__ == "__main__":
    key0, key1 = jax.random.split(jax.random.PRNGKey(0))

    # Parameter init matches nn.Parameter(torch.ones(1) * 3).
    p = jnp.ones((1,), dtype=jnp.float32) * 3.0

    # 1) Lane-dense path (H*W multiple of 128 -> k == 1).
    N, C, H, W = 2, 4, 16, 16
    x = jax.random.normal(key0, (N, C, H, W), dtype=jnp.float32)
    y = gem_pool(x, p, eps=1e-6)
    jax.block_until_ready(y)
    y_ref = gem_ref(x, p, eps=1e-6)
    assert y.shape == (N, C, 1, 1), y.shape
    assert jnp.allclose(y, y_ref, rtol=1e-4, atol=1e-5), (
        f"max abs err {jnp.max(jnp.abs(y - y_ref))}")

    # 2) Lane-packing path (7x7 feature map -> hw=49, k=2 rows packed per lane-row).
    x2 = jax.random.normal(key1, (2, 8, 7, 7), dtype=jnp.float32)
    y2 = gem_pool(x2, p, eps=1e-6)
    jax.block_until_ready(y2)
    y2_ref = gem_ref(x2, p, eps=1e-6)
    assert y2.shape == (2, 8, 1, 1), y2.shape
    assert jnp.allclose(y2, y2_ref, rtol=1e-4, atol=1e-5), (
        f"max abs err {jnp.max(jnp.abs(y2 - y2_ref))}")

    print("KERNEL_OK")
</pallas_src>

<mosaic_0001>
module attributes {stable_mosaic.version = 11 : i64} {
  func.func @_gem_kernel(%arg0: i32, %arg1: memref<1xf32, #tpu.memory_space<smem>>, %arg2: memref<8x256xf32, #tpu.memory_space<vmem>>, %arg3: memref<8x1xf32, #tpu.memory_space<vmem>>) attributes {dimension_semantics = [#tpu.dimension_semantics<parallel>], iteration_bounds = array<i64: 1>, scalar_prefetch = 0 : i64, scratch_operands = 0 : i64, tpu.core_type = #tpu.core_type<tc>, window_params = [{transform_indices = @transform_0, window_bounds = array<i64: 1>}, {transform_indices = @transform_1, window_bounds = array<i64: 8, 256>}, {transform_indices = @transform_2, window_bounds = array<i64: 8, 1>}]} {
    %c0 = arith.constant 0 : index
    %0 = memref.load %arg1[%c0] : memref<1xf32, #tpu.memory_space<smem>>
    %c0_0 = arith.constant 0 : index
    %c0_1 = arith.constant 0 : index
    %1 = vector.load %arg2[%c0_0, %c0_1] : memref<8x256xf32, #tpu.memory_space<vmem>>, vector<8x256xf32>
    %cst = arith.constant 9.99999997E-7 : f32
    %2 = vector.broadcast %cst : f32 to vector<8x256xf32>
    %3 = arith.maximumf %1, %2 : vector<8x256xf32>
    %4 = math.log %3 : vector<8x256xf32>
    %5 = vector.broadcast %0 : f32 to vector<8x256xf32>
    %6 = arith.mulf %5, %4 : vector<8x256xf32>
    %7 = math.exp %6 : vector<8x256xf32>
    %cst_2 = arith.constant dense<0.000000e+00> : vector<8xf32>
    %8 = vector.multi_reduction <add>, %7, %cst_2 [1] : vector<8x256xf32> to vector<8xf32>
    %9 = vector.shape_cast %8 : vector<8xf32> to vector<8x1xf32>
    %cst_3 = arith.constant 3.906250e-03 : f32
    %10 = vector.broadcast %cst_3 : f32 to vector<8x1xf32>
    %11 = arith.mulf %9, %10 : vector<8x1xf32>
    %cst_4 = arith.constant 1.000000e+00 : f32
    %12 = arith.divf %cst_4, %0 : f32
    %13 = math.log %11 : vector<8x1xf32>
    %14 = vector.broadcast %12 : f32 to vector<8x1xf32>
    %15 = arith.mulf %13, %14 : vector<8x1xf32>
    %16 = math.exp %15 : vector<8x1xf32>
    %c0_5 = arith.constant 0 : index
    %c0_6 = arith.constant 0 : index
    %17 = vector.load %arg3[%c0_5, %c0_6] : memref<8x1xf32, #tpu.memory_space<vmem>>, vector<8x1xf32>
    tpu.vector_store %arg3[%c0_5, %c0_6], %16 {strides = array<i32>} : memref<8x1xf32, #tpu.memory_space<vmem>>, vector<8x1xf32>,
    return
  }
  func.func @transform_0(%arg0: i32) -> i32 {
    %c0_i32 = arith.constant 0 : i32
    %c0_i32_0 = arith.constant 0 : i32
    return %c0_i32 : i32
  }
  func.func @transform_1(%arg0: i32) -> (i32, i32) {
    %c0_i32 = arith.constant 0 : i32
    %c0_i32_0 = arith.constant 0 : i32
    return %arg0, %c0_i32 : i32, i32
  }
  func.func @transform_2(%arg0: i32) -> (i32, i32) {
    %c0_i32 = arith.constant 0 : i32
    %c0_i32_0 = arith.constant 0 : i32
    return %arg0, %c0_i32 : i32, i32
  }
}

</mosaic_0001>

<bundles_post_ra>
// kernel: tpu_custom_call.1
= control target key start
LH: loop header
LB: loop body
LE: loop exit
PB: predicated region body
PF: predicated region fallthrough
CT: control target
= control target key end

     0   :  { %8 = vsyncpa [#allocation4], 0  ;;  %s118_s12 = smov [#allocation3]   ;;  %s143_s0 = inlined_call_operand.<no memory space> [shape: f32[1], index: 0, kind: input, shape index: {}]   ;;  %s144_s1 = inlined_call_operand.hbm [shape: f32[8,256], index: 1, kind: input, shape index: {}]   ;;  %s145_s2 = inlined_call_operand.vmem [shape: f32[8,1], index: 2, kind: output, shape index: {}]  }
   0x1   :  { %s16_s11 = sshll.u32 %s144_s1, 4  ;;  %s18_s13 = sshll.u32 %s118_s12, 4  ;;  %s17_s11 = int_to_ptr.hbm [resolvable:$true] %s16_s11  ;;  %s19_s13 = int_to_ptr.vmem [resolvable:$true] %s18_s13 }
   0x2   :  { %21 = dma.hbm_to_vmem [thread:$0]  %s17_s11, 256, %s19_s13, [#allocation4]  }
   0x3   :  { %116 = dma.done.wait [#allocation4], 256  }
   0x4   :  { %117 = vsyncadd [#allocation4], 4294967040  ;;  %v35_v0 = vstv %s143_s0  ;;  %v27_v2 = vld [vmem:[#allocation3] sm:$0xff]  ;;  %v28_v3 = vld [vmem:[#allocation3 + $0x8] sm:$0xff]  ;;  %vm68_vm4 = vcmask 7168  }
   0x5   :  { %78 = vrcp.f32 %v35_v0  ;;  %v29_v4 = vmax.f32 %v27_v2, 1e-06  ;;  %v30_v5 = vmax.f32 %v28_v3, 1e-06  ;;  %vm52_vm0 = vweird.f32 %v35_v0 }
   0x6   :  { %v58_v7 = vand.u32 2147483648, %v35_v0  ;;  %v56_v9 = vand.u32 2147483647, %v35_v0 }
   0x7   :  { %80 = vlog2.f32 %v29_v4 }
   0x8   :  { %82 = vlog2.f32 %v30_v5  ;;  %v59_v11 = vor.u32 1.1754944e-38, %v58_v7  ;;  %vm57_vm3 = vcmp.eq.f32.partialorder %v56_v9, 8.507059e+37 }
   0xb   :  { %v79_v1 = vpop.eup %78 }
   0xc   :  { %v48_v6 = vmul.f32 %v79_v1, %v35_v0  ;;  %vm53_vm1 = vweird.f32 %v79_v1 }
   0xd   :  { %vm54_vm2 = vmor %vm52_vm0, %vm53_vm1  ;;  %v81_v13 = vpop.eup %80 }
   0xe   :  { %v49_v8 = vsub.f32 1.0, %v48_v6  ;;  %v83_v15 = vpop.eup %82  ;;  %v32_v16 = vmul.f32 0.6931472, %v81_v13 }
   0xf   :  { %v34_v18 = vmul.f32 0.6931472, %v83_v15 }
  0x10   :  { %v50_v10 = vmul.f32 %v79_v1, %v49_v8  ;;  %v36_v19 = vmul.f32 %v35_v0, %v32_v16 }
  0x11   :  { %v37_v20 = vmul.f32 %v35_v0, %v34_v18 }
  0x12   :  { %v51_v12 = vadd.f32 %v79_v1, %v50_v10  ;;  %v38_v21 = vmul.f32 1.442695, %v36_v19 }
  0x13   :  { %v40_v22 = vmul.f32 1.442695, %v37_v20 }
  0x14   :  { %v55_v14 = vsel %vm54_vm2, %v79_v1, %v51_v12  ;;  %84 = vpow2.f32 %v38_v21 }
  0x15   :  { %v60_v17 = vsel %vm57_vm3, %v59_v11, %v55_v14  ;;  %86 = vpow2.f32 %v40_v22 }
  0x16   :  { %75 = vpush %v60_v17 }
  0x1a   :  { %v85_v23 = vpop.eup %84 }
  0x1b   :  { %v87_v24 = vpop.eup %86 }
  0x1c   :  { %v42_v25 = vadd.f32 %v87_v24, %v85_v23 }
  0x1e   :  { %43 = vadd.xlane.f32.xlu0 %v42_v25 }
  0x47   :  { %s76_s0 = spop %75 }
  0x48   :  { %v64_v29 = vstv %s76_s0 }
  0x91   :  { %v44_v26 = vpop.xlane.xlu0 %43 }
  0x92   :  { %v45_v27 = vmul.f32 0.00390625, %v44_v26 }
  0x94   :  { %88 = vlog2.f32 %v45_v27 }
  0x9a   :  { %v89_v28 = vpop.eup %88 }
  0x9b   :  { %v63_v30 = vmul.f32 0.6931472, %v89_v28 }
  0x9d   :  { %v65_v31 = vmul.f32 %v64_v29, %v63_v30 }
  0x9f   :  { %v66_v32 = vmul.f32 1.442695, %v65_v31 }
  0xa1   :  { %90 = vpow2.f32 %v66_v32 }
  0xa7   :  { %v91_v33 = vpop.eup %90 }
  0xa8   :  { %69 = vst.msk [vmem:[%s145_s2] sm:$0xff] %vm68_vm4, %v91_v33 }
  0xa9   :  { %74 = vsyncpa [#allocation4], 1 }

</bundles_post_ra>
